<compile_context>
chip_gen: v7x
topology: tpu7x:2x2x1
jax: 0.10.0
libtpu: 0.0.40
codegen_flags: <defaults>
</compile_context>

<pallas_src>
import jax
import jax.numpy as jnp
from jax.experimental import pallas as pl
from jax.experimental.pallas import tpu as pltpu

NEG_SLOPE = 0.01  # F.leaky_relu default negative_slope


def _leaky_relu(x):
    # max(x, 0.01*x) == leaky_relu(x) since 0 < NEG_SLOPE < 1; 2 VALU ops.
    return jnp.maximum(x, NEG_SLOPE * x)


def _round_up(x, m):
    return (x + m - 1) // m * m


def _choose_tile(B, tile_rows):
    """Pick the batch tile TB."""
    if B >= 256:
        # >=2 grid tiles so v7x megacore shards the batch; 128-aligned rows.
        tb = _round_up(pl.cdiv(B, 2), 128)
        tb = min(_round_up(tile_rows, 128), tb)
        return max(tb, 128)
    # Small batches: one (or a few) 8-aligned tiles.
    return min(_round_up(B, 8), max(8, _round_up(tile_rows, 8)))


def entire_estimator_kernel(x_ref, w_in_ref, b_in_ref, w_res_ref, b_res_ref,
                            w_out_ref, b_out_ref, o_ref):
    # x_ref:    (TB, D)  bf16        w_in_ref: (D, H)   bf16
    # b_in_ref: (1, H)   f32
    # w_res_ref:(F, H, H) bf16       b_res_ref:(F, 1, H) f32
    # w_out_ref:(H, 1)   bf16        b_out_ref:(1, 1)   f32
    # o_ref:    (TB, 1)  f32

    # input2hid: single K = A+S matmul, bf16 operands, f32 accumulation.
    h = jnp.dot(x_ref[...], w_in_ref[...], preferred_element_type=jnp.float32)
    h = _leaky_relu(h + b_in_ref[...])                       # f32 elementwise

    # Residual stack: h = h + leaky_relu(h @ W_i + b_i); static unroll gives
    # static ref views and full ILP.
    num_fcs = w_res_ref.shape[0]
    for i in range(num_fcs):
        r = jnp.dot(h.astype(jnp.bfloat16), w_res_ref[i],
                    preferred_element_type=jnp.float32)
        h = h + _leaky_relu(r + b_res_ref[i])

    # feature_extract: (TB, H) @ (H, 1) -> (TB, 1); tiny masked store is fine.
    out = jnp.dot(h.astype(jnp.bfloat16), w_out_ref[...],
                  preferred_element_type=jnp.float32)
    o_ref[...] = out + b_out_ref[...]


def entire_estimator_forward(attr_t, sptm_t, params, *, tile_rows=1024):
    """Pallas implementation of EntireEstimator.forward (returns (B, 1))."""
    if sptm_t.ndim == 1:
        sptm_t = sptm_t.reshape(1, -1)
    attr_t = attr_t.astype(jnp.float32)
    sptm_t = sptm_t.astype(jnp.float32)

    B, A = attr_t.shape
    S = sptm_t.shape[1]
    D = A + S
    w_in = params["w_in"]
    assert w_in.shape[0] == D, f"w_in rows {w_in.shape[0]} != A+S {D}"
    H = w_in.shape[1]
    num_fcs = params["w_res"].shape[0]

    # One concatenated bf16 input (single K=A+S matmul; half the input DMA).
    x = jnp.concatenate((attr_t, sptm_t), axis=1).astype(jnp.bfloat16)

    # bf16 matmul operands; biases stay f32 (element-wise path stays f32).
    w_in_b = w_in.astype(jnp.bfloat16)
    w_res_b = params["w_res"].astype(jnp.bfloat16)
    w_out_b = params["w_out"].reshape(H, 1).astype(jnp.bfloat16)
    b_in = params["b_in"].reshape(1, H).astype(jnp.float32)
    b_res = params["b_res"].reshape(num_fcs, 1, H).astype(jnp.float32)
    b_out = params["b_out"].reshape(1, 1).astype(jnp.float32)

    TB = _choose_tile(B, tile_rows)
    B_pad = _round_up(B, TB)
    if B_pad != B:
        x = jnp.pad(x, ((0, B_pad - B), (0, 0)))
    num_tiles = B_pad // TB

    flops = 2 * B_pad * H * (D + num_fcs * H + 1)
    bytes_accessed = (2 * B_pad * D                       # bf16 input
                      + 4 * B_pad                         # f32 output
                      + 2 * (D * H + num_fcs * H * H + H)  # bf16 weights
                      + 4 * (H + num_fcs * H + 1))         # f32 biases

    const2 = lambda i: (0, 0)
    const3 = lambda i: (0, 0, 0)

    out = pl.pallas_call(
        entire_estimator_kernel,
        out_shape=jax.ShapeDtypeStruct((B_pad, 1), jnp.float32),
        grid=(num_tiles,),
        in_specs=[
            pl.BlockSpec((TB, D), lambda i: (i, 0)),        # x tile (streamed)
            pl.BlockSpec((D, H), const2),                   # w_in  (resident)
            pl.BlockSpec((1, H), const2),                   # b_in  (resident)
            pl.BlockSpec((num_fcs, H, H), const3),          # w_res (resident)
            pl.BlockSpec((num_fcs, 1, H), const3),          # b_res (resident)
            pl.BlockSpec((H, 1), const2),                   # w_out (resident)
            pl.BlockSpec((1, 1), const2),                   # b_out (resident)
        ],
        out_specs=pl.BlockSpec((TB, 1), lambda i: (i, 0)),
        compiler_params=pltpu.CompilerParams(
            dimension_semantics=("parallel",),
            vmem_limit_bytes=64 * 1024 * 1024),
        cost_estimate=pl.CostEstimate(
            flops=flops, transcendentals=0, bytes_accessed=bytes_accessed),
    )(x, w_in_b, b_in, w_res_b, b_res, w_out_b, b_out)

    return out[:B]


def init_params(key, input_size, num_final_fcs, hidden_size):
    """Deterministic synthetic parameters (shapes match the nn.Module)."""
    ks = jax.random.split(key, 6)
    scale = 0.1
    return {
        "w_in":  scale * jax.random.normal(ks[0], (input_size, hidden_size), jnp.float32),
        "b_in":  scale * jax.random.normal(ks[1], (1, hidden_size), jnp.float32),
        "w_res": scale * jax.random.normal(ks[2], (num_final_fcs, hidden_size, hidden_size), jnp.float32),
        "b_res": scale * jax.random.normal(ks[3], (num_final_fcs, 1, hidden_size), jnp.float32),
        "w_out": scale * jax.random.normal(ks[4], (hidden_size, 1), jnp.float32),
        "b_out": scale * jax.random.normal(ks[5], (1, 1), jnp.float32),
    }


def reference_forward(attr_t, sptm_t, params, *, bf16_matmul=False):
    """Pure-JAX reference of the PyTorch forward, for verification."""
    if sptm_t.ndim == 1:
        sptm_t = sptm_t.reshape(1, -1)
    x = jnp.concatenate((attr_t, sptm_t), axis=1)

    def mm(a, b):
        if bf16_matmul:
            a = a.astype(jnp.bfloat16)
            b = b.astype(jnp.bfloat16)
        return jnp.dot(a, b, preferred_element_type=jnp.float32)

    h = _leaky_relu(mm(x, params["w_in"]) + params["b_in"])
    for i in range(params["w_res"].shape[0]):
        h = h + _leaky_relu(mm(h, params["w_res"][i]) + params["b_res"][i])
    return mm(h, params["w_out"]) + params["b_out"]


if __name__ == "__main__":
    # Small shapes consistent with the module:
    #   attr features A=16, sptm features S=16 -> input_size=32, hidden=32,
    #   3 residual FCs.  Batch 20 with tile_rows=8 exercises the batch grid
    #   (3 tiles) plus padding; production calls use the default 1024-row
    #   (>=2-tile, 128-aligned) tiles.
    B, A, S = 20, 16, 16
    HIDDEN = 32
    NUM_FINAL_FCS = 3
    INPUT_SIZE = A + S

    key = jax.random.PRNGKey(0)
    k_attr, k_sptm, k_params = jax.random.split(key, 3)

    attr_t = jax.random.normal(k_attr, (B, A), jnp.float32)
    sptm_t = jax.random.normal(k_sptm, (B, S), jnp.float32)
    params = init_params(k_params, INPUT_SIZE, NUM_FINAL_FCS, HIDDEN)

    out = entire_estimator_forward(attr_t, sptm_t, params, tile_rows=8)
    out = jax.block_until_ready(out)
    assert out.shape == (B, 1), out.shape

    # Exact-path check (same bf16-operand / f32-accumulate recipe).
    ref_bf16 = reference_forward(attr_t, sptm_t, params, bf16_matmul=True)
    assert jnp.allclose(out, ref_bf16, atol=5e-3, rtol=5e-3), \
        "mismatch vs bf16-matmul reference"

    # Loose check against the full-f32 PyTorch-equivalent forward.
    ref_f32 = reference_forward(attr_t, sptm_t, params, bf16_matmul=False)
    assert jnp.allclose(out, ref_f32, atol=5e-2, rtol=5e-2), \
        "mismatch vs f32 reference"

    # TODO(synk): eval_on_batch (MSELoss + numpy detach) is host-side metric
    # code, not part of the forward pass; intentionally not a kernel.
    print("KERNEL_OK")
</pallas_src>

<mosaic_0001>
module attributes {stable_mosaic.version = 11 : i64} {
  func.func @entire_estimator_kernel(%arg0: i32, %arg1: memref<8x32xbf16, #tpu.memory_space<vmem>>, %arg2: memref<32x32xbf16, #tpu.memory_space<vmem>>, %arg3: memref<1x32xf32, #tpu.memory_space<vmem>>, %arg4: memref<3x32x32xbf16, #tpu.memory_space<vmem>>, %arg5: memref<3x1x32xf32, #tpu.memory_space<vmem>>, %arg6: memref<32x1xbf16, #tpu.memory_space<vmem>>, %arg7: memref<1x1xf32, #tpu.memory_space<vmem>>, %arg8: memref<8x1xf32, #tpu.memory_space<vmem>>) attributes {dimension_semantics = [#tpu.dimension_semantics<parallel>], iteration_bounds = array<i64: 3>, scalar_prefetch = 0 : i64, scratch_operands = 0 : i64, tpu.core_type = #tpu.core_type<tc>, window_params = [{transform_indices = @transform_0, window_bounds = array<i64: 8, 32>}, {pipeline_mode = #tpu.pipeline_mode<synchronous>, transform_indices = @transform_1, window_bounds = array<i64: 32, 32>}, {pipeline_mode = #tpu.pipeline_mode<synchronous>, transform_indices = @transform_2, window_bounds = array<i64: 1, 32>}, {pipeline_mode = #tpu.pipeline_mode<synchronous>, transform_indices = @transform_3, window_bounds = array<i64: 3, 32, 32>}, {pipeline_mode = #tpu.pipeline_mode<synchronous>, transform_indices = @transform_4, window_bounds = array<i64: 3, 1, 32>}, {pipeline_mode = #tpu.pipeline_mode<synchronous>, transform_indices = @transform_5, window_bounds = array<i64: 32, 1>}, {pipeline_mode = #tpu.pipeline_mode<synchronous>, transform_indices = @transform_6, window_bounds = array<i64: 1, 1>}, {transform_indices = @transform_7, window_bounds = array<i64: 8, 1>}]} {
    %c0 = arith.constant 0 : index
    %c0_0 = arith.constant 0 : index
    %0 = vector.load %arg1[%c0, %c0_0] : memref<8x32xbf16, #tpu.memory_space<vmem>>, vector<8x32xbf16>
    %c0_1 = arith.constant 0 : index
    %c0_2 = arith.constant 0 : index
    %1 = vector.load %arg2[%c0_1, %c0_2] : memref<32x32xbf16, #tpu.memory_space<vmem>>, vector<32x32xbf16>
    %cst = arith.constant dense<0.000000e+00> : vector<8x32xf32>
    %2 = tpu.matmul %0, %1, %cst {dimension_numbers = #tpu.dot_dimension_numbers<[1], [0], [0], [1], [0, 0, 1, 1], [], []>} : vector<8x32xbf16>, vector<32x32xbf16>, vector<8x32xf32> -> vector<8x32xf32>
    %c0_3 = arith.constant 0 : index
    %c0_4 = arith.constant 0 : index
    %3 = vector.load %arg3[%c0_3, %c0_4] : memref<1x32xf32, #tpu.memory_space<vmem>>, vector<1x32xf32>
    %4 = vector.broadcast %3 : vector<1x32xf32> to vector<8x32xf32>
    %5 = arith.addf %2, %4 : vector<8x32xf32>
    %cst_5 = arith.constant 0.00999999977 : f32
    %6 = vector.broadcast %cst_5 : f32 to vector<8x32xf32>
    %7 = arith.mulf %6, %5 : vector<8x32xf32>
    %8 = arith.maximumf %5, %7 : vector<8x32xf32>
    %9 = arith.truncf %8 : vector<8x32xf32> to vector<8x32xbf16>
    %c0_6 = arith.constant 0 : index
    %c0_7 = arith.constant 0 : index
    %c0_8 = arith.constant 0 : index
    %10 = vector.load %arg4[%c0_6, %c0_7, %c0_8] : memref<3x32x32xbf16, #tpu.memory_space<vmem>>, vector<1x32x32xbf16>
    %11 = vector.shape_cast %10 : vector<1x32x32xbf16> to vector<32x32xbf16>
    %cst_9 = arith.constant dense<0.000000e+00> : vector<8x32xf32>
    %12 = tpu.matmul %9, %11, %cst_9 {dimension_numbers = #tpu.dot_dimension_numbers<[1], [0], [0], [1], [0, 0, 1, 1], [], []>} : vector<8x32xbf16>, vector<32x32xbf16>, vector<8x32xf32> -> vector<8x32xf32>
    %c0_10 = arith.constant 0 : index
    %c0_11 = arith.constant 0 : index
    %c0_12 = arith.constant 0 : index
    %13 = vector.load %arg5[%c0_10, %c0_11, %c0_12] : memref<3x1x32xf32, #tpu.memory_space<vmem>>, vector<1x1x32xf32>
    %14 = vector.shape_cast %13 : vector<1x1x32xf32> to vector<1x32xf32>
    %15 = vector.broadcast %14 : vector<1x32xf32> to vector<8x32xf32>
    %16 = arith.addf %12, %15 : vector<8x32xf32>
    %cst_13 = arith.constant 0.00999999977 : f32
    %17 = vector.broadcast %cst_13 : f32 to vector<8x32xf32>
    %18 = arith.mulf %17, %16 : vector<8x32xf32>
    %19 = arith.maximumf %16, %18 : vector<8x32xf32>
    %20 = arith.addf %8, %19 : vector<8x32xf32>
    %21 = arith.truncf %20 : vector<8x32xf32> to vector<8x32xbf16>
    %c1 = arith.constant 1 : index
    %c0_14 = arith.constant 0 : index
    %c0_15 = arith.constant 0 : index
    %22 = vector.load %arg4[%c1, %c0_14, %c0_15] : memref<3x32x32xbf16, #tpu.memory_space<vmem>>, vector<1x32x32xbf16>
    %23 = vector.shape_cast %22 : vector<1x32x32xbf16> to vector<32x32xbf16>
    %cst_16 = arith.constant dense<0.000000e+00> : vector<8x32xf32>
    %24 = tpu.matmul %21, %23, %cst_16 {dimension_numbers = #tpu.dot_dimension_numbers<[1], [0], [0], [1], [0, 0, 1, 1], [], []>} : vector<8x32xbf16>, vector<32x32xbf16>, vector<8x32xf32> -> vector<8x32xf32>
    %c1_17 = arith.constant 1 : index
    %c0_18 = arith.constant 0 : index
    %c0_19 = arith.constant 0 : index
    %25 = vector.load %arg5[%c1_17, %c0_18, %c0_19] : memref<3x1x32xf32, #tpu.memory_space<vmem>>, vector<1x1x32xf32>
    %26 = vector.shape_cast %25 : vector<1x1x32xf32> to vector<1x32xf32>
    %27 = vector.broadcast %26 : vector<1x32xf32> to vector<8x32xf32>
    %28 = arith.addf %24, %27 : vector<8x32xf32>
    %cst_20 = arith.constant 0.00999999977 : f32
    %29 = vector.broadcast %cst_20 : f32 to vector<8x32xf32>
    %30 = arith.mulf %29, %28 : vector<8x32xf32>
    %31 = arith.maximumf %28, %30 : vector<8x32xf32>
    %32 = arith.addf %20, %31 : vector<8x32xf32>
    %33 = arith.truncf %32 : vector<8x32xf32> to vector<8x32xbf16>
    %c2 = arith.constant 2 : index
    %c0_21 = arith.constant 0 : index
    %c0_22 = arith.constant 0 : index
    %34 = vector.load %arg4[%c2, %c0_21, %c0_22] : memref<3x32x32xbf16, #tpu.memory_space<vmem>>, vector<1x32x32xbf16>
    %35 = vector.shape_cast %34 : vector<1x32x32xbf16> to vector<32x32xbf16>
    %cst_23 = arith.constant dense<0.000000e+00> : vector<8x32xf32>
    %36 = tpu.matmul %33, %35, %cst_23 {dimension_numbers = #tpu.dot_dimension_numbers<[1], [0], [0], [1], [0, 0, 1, 1], [], []>} : vector<8x32xbf16>, vector<32x32xbf16>, vector<8x32xf32> -> vector<8x32xf32>
    %c2_24 = arith.constant 2 : index
    %c0_25 = arith.constant 0 : index
    %c0_26 = arith.constant 0 : index
    %37 = vector.load %arg5[%c2_24, %c0_25, %c0_26] : memref<3x1x32xf32, #tpu.memory_space<vmem>>, vector<1x1x32xf32>
    %38 = vector.shape_cast %37 : vector<1x1x32xf32> to vector<1x32xf32>
    %39 = vector.broadcast %38 : vector<1x32xf32> to vector<8x32xf32>
    %40 = arith.addf %36, %39 : vector<8x32xf32>
    %cst_27 = arith.constant 0.00999999977 : f32
    %41 = vector.broadcast %cst_27 : f32 to vector<8x32xf32>
    %42 = arith.mulf %41, %40 : vector<8x32xf32>
    %43 = arith.maximumf %40, %42 : vector<8x32xf32>
    %44 = arith.addf %32, %43 : vector<8x32xf32>
    %45 = arith.truncf %44 : vector<8x32xf32> to vector<8x32xbf16>
    %c0_28 = arith.constant 0 : index
    %c0_29 = arith.constant 0 : index
    %46 = vector.load %arg6[%c0_28, %c0_29] : memref<32x1xbf16, #tpu.memory_space<vmem>>, vector<32x1xbf16>
    %cst_30 = arith.constant dense<0.000000e+00> : vector<8x1xf32>
    %47 = tpu.matmul %45, %46, %cst_30 {dimension_numbers = #tpu.dot_dimension_numbers<[1], [0], [0], [1], [0, 0, 1, 1], [], []>} : vector<8x32xbf16>, vector<32x1xbf16>, vector<8x1xf32> -> vector<8x1xf32>
    %c0_31 = arith.constant 0 : index
    %c0_32 = arith.constant 0 : index
    %48 = vector.load %arg7[%c0_31, %c0_32] : memref<1x1xf32, #tpu.memory_space<vmem>>, vector<1x1xf32>
    %49 = vector.broadcast %48 : vector<1x1xf32> to vector<8x1xf32>
    %50 = arith.addf %47, %49 : vector<8x1xf32>
    %c0_33 = arith.constant 0 : index
    %c0_34 = arith.constant 0 : index
    %51 = vector.load %arg8[%c0_33, %c0_34] : memref<8x1xf32, #tpu.memory_space<vmem>>, vector<8x1xf32>
    tpu.vector_store %arg8[%c0_33, %c0_34], %50 {strides = array<i32>} : memref<8x1xf32, #tpu.memory_space<vmem>>, vector<8x1xf32>,
    return
  }
  func.func @transform_0(%arg0: i32) -> (i32, i32) {
    %c0_i32 = arith.constant 0 : i32
    %c0_i32_0 = arith.constant 0 : i32
    return %arg0, %c0_i32 : i32, i32
  }
  func.func @transform_1(%arg0: i32) -> (i32, i32) {
    %c0_i32 = arith.constant 0 : i32
    %c0_i32_0 = arith.constant 0 : i32
    %c0_i32_1 = arith.constant 0 : i32
    return %c0_i32, %c0_i32_0 : i32, i32
  }
  func.func @transform_2(%arg0: i32) -> (i32, i32) {
    %c0_i32 = arith.constant 0 : i32
    %c0_i32_0 = arith.constant 0 : i32
    %c0_i32_1 = arith.constant 0 : i32
    return %c0_i32, %c0_i32_0 : i32, i32
  }
  func.func @transform_3(%arg0: i32) -> (i32, i32, i32) {
    %c0_i32 = arith.constant 0 : i32
    %c0_i32_0 = arith.constant 0 : i32
    %c0_i32_1 = arith.constant 0 : i32
    %c0_i32_2 = arith.constant 0 : i32
    return %c0_i32, %c0_i32_0, %c0_i32_1 : i32, i32, i32
  }
  func.func @transform_4(%arg0: i32) -> (i32, i32, i32) {
    %c0_i32 = arith.constant 0 : i32
    %c0_i32_0 = arith.constant 0 : i32
    %c0_i32_1 = arith.constant 0 : i32
    %c0_i32_2 = arith.constant 0 : i32
    return %c0_i32, %c0_i32_0, %c0_i32_1 : i32, i32, i32
  }
  func.func @transform_5(%arg0: i32) -> (i32, i32) {
    %c0_i32 = arith.constant 0 : i32
    %c0_i32_0 = arith.constant 0 : i32
    %c0_i32_1 = arith.constant 0 : i32
    return %c0_i32, %c0_i32_0 : i32, i32
  }
  func.func @transform_6(%arg0: i32) -> (i32, i32) {
    %c0_i32 = arith.constant 0 : i32
    %c0_i32_0 = arith.constant 0 : i32
    %c0_i32_1 = arith.constant 0 : i32
    return %c0_i32, %c0_i32_0 : i32, i32
  }
  func.func @transform_7(%arg0: i32) -> (i32, i32) {
    %c0_i32 = arith.constant 0 : i32
    %c0_i32_0 = arith.constant 0 : i32
    return %arg0, %c0_i32 : i32, i32
  }
}

</mosaic_0001>

<bundles_post_ra>
// kernel: tpu_custom_call.1
= control target key start
LH: loop header
LB: loop body
LE: loop exit
PB: predicated region body
PF: predicated region fallthrough
CT: control target
= control target key end

     0   :  { %s1699_s0 = inlined_call_operand.hbm [shape: bf16[24,32], index: 0, kind: input, shape index: {}]   ;;  %s1700_s1 = inlined_call_operand.hbm [shape: bf16[32,32], index: 1, kind: input, shape index: {}]   ;;  %s1701_s2 = inlined_call_operand.hbm [shape: f32[1,32], index: 2, kind: input, shape index: {}]   ;;  %s1702_s3 = inlined_call_operand.hbm [shape: bf16[3,32,32], index: 3, kind: input, shape index: {}]   ;;  %s1703_s4 = inlined_call_operand.hbm [shape: f32[3,1,32], index: 4, kind: input, shape index: {}]   ;;  %s1704_s5 = inlined_call_operand.hbm [shape: bf16[32,1], index: 5, kind: input, shape index: {}]   ;;  %s1705_s6 = inlined_call_operand.<no memory space> [shape: f32[1,1], index: 6, kind: input, shape index: {}]   ;;  %s1706_s7 = inlined_call_operand.hbm [shape: f32[24,1], index: 7, kind: output, shape index: {}]  }
   0x1   :  { %v12_v0 = vstv %s1705_s6 }
   0x2   :  { %13 = vst [vmem:[#allocation2] sm:$0x1] %v12_v0 }
   0x3   :  { %14 = vsyncpa [#allocation4], 0 }
   0x4   :  { %16 = vsyncpa [#allocation4 + $0x1], 0 }
   0x5   :  { %17 = vsyncpa [#allocation7], 0 }
   0x6   :  { %18 = vsyncpa [#allocation10], 0 }
   0x7   :  { %19 = vsyncpa [#allocation13], 0 }
   0x8   :  { %20 = vsyncpa [#allocation5], 0 }
   0x9   :  { %22 = vsyncpa [#allocation5 + $0x1], 0  ;;  %s1369_s26 = smov 0   ;;  %s1371_s27 = smov 0  }
   0xa   :  { %s1373_s28 = smov 0   ;;  %s1375_s29 = smov 0  }
   0xb LB: > { %s1313_s6 = smov [#allocation6]   ;;  %s1390_s8 = sadd.s32 4294967295, %s1311_s29   ;;  %s1311_s29 = sphi %s1375_s29, %s1730_s29   ;;  %s1307_s28 = sphi %s1373_s28, %s1729_s28   ;;  %s1303_s27 = sphi %s1371_s27, %s1728_s27   ;;  %s1299_s26 = sphi %s1369_s26, %s1727_s26  }
   0xc   : > { %s223_s30 = sshll.u32 %s1313_s6, 4  ;;  %p854_p0 = scmp.ge.s32.totalorder %s1311_s29, 1  ;;  %s1395_s30 = int_to_ptr.vmem [resolvable:$true] %s223_s30 }
   0xd   : > { %p1707_p1 = scmp.eq.s32.totalorder %s1390_s8, 0  ;;  %p211_p2 = scmp.lt.s32.totalorder %s1311_s29, 4 }
   0xe   : > { %s1314_s10 = smov [#allocation9]   ;;  %s1315_s13 = smov [#allocation8]  }
   0xf   : > { %p1397_p3 = pnand %p854_p0, %p211_p2  ;;  %s247_s11 = sshll.u32 %s1314_s10, 4  ;;  %s1409_s11 = int_to_ptr.vmem [resolvable:$true] %s247_s11 }
  0x10   : > { %s237_s14 = sshll.u32 %s1315_s13, 4  ;;  %s1063_s17 = scalar_lea.hbm %s1700_s1, 256  ;;  %s1411_s14 = int_to_ptr.vmem [resolvable:$true] %s237_s14 }
  0x11   : > { %s1710_s9 = scalar_select %p1397_p3, 1, 0 }
  0x12   : > { %p974_p4 = pneg %p1397_p3  ;;  %p1064_p6 = scmp.ne.s32.totalorder %s1700_s1, %s1063_s17 }
  0x13   : > { %p1070_p10 = scmp.lt.u32.totalorder %s1063_s17, %s1700_s1 }
  0x14   : > { %p1405_p5 = pnand %p974_p4, %p1707_p1 }
  0x16   : > { %p1421_p7 = pneg %p1405_p5 }
  0x18   : > { %p1066_p8 = pnand %p1421_p7, %p1064_p6 }
  0x1a   : > { %p1067_p9 = pneg %p1066_p8 }
  0x1c   : > { %p1072_p11 = pnand %p1070_p10, %p1067_p9 }
  0x1e   : > { %1075 = shalt.err (!%p1072_p11)
}
  0x1f   : > { %s1076_s23 = scalar_lea.vmem %s1395_s30, 256  ;;  %p1084_p2 = scmp.lt.s32.totalorder %s1395_s30, %s1395_s30 }
  0x20   : > { %p1077_p12 = scmp.ne.s32.totalorder %s1395_s30, %s1076_s23  ;;  %p1085_p4 = scmp.lt.s32.totalorder %s1076_s23, %s1076_s23 }
  0x22   : > { %p1079_p13 = pnand %p1077_p12, %p1421_p7  ;;  %p1086_p6 = por %p1085_p4, %p1084_p2 }
  0x24   : > { %p1080_p0 = pneg %p1079_p13 }
  0x26   : > { %p1087_p8 = pnand %p1086_p6, %p1080_p0 }
  0x28   : > { %1090 = shalt.err (!%p1087_p8)
}
  0x29   : > { %s1316_s24 = smov 64   ;;  %s1317_s25 = smov 4  }
  0x2a   : > { %977 = dma.hbm_to_vmem [thread:$0]  (!%p1405_p5), %s1700_s1, 256, %s1395_s30, [#allocation7], %s1316_s24, %s1316_s24, %s1317_s25  }
  0x2b   : > { %s1091_s16 = scalar_lea.hbm %s1702_s3, 768 }
  0x2c   : > { %p1092_p9 = scmp.ne.s32.totalorder %s1702_s3, %s1091_s16  ;;  %p1098_p12 = scmp.lt.u32.totalorder %s1091_s16, %s1702_s3 }
  0x2e   : > { %p1094_p10 = pnand %p1092_p9, %p1421_p7 }
  0x30   : > { %p1095_p11 = pneg %p1094_p10 }
  0x32   : > { %p1100_p13 = pnand %p1098_p12, %p1095_p11 }
  0x34   : > { %1103 = shalt.err (!%p1100_p13)
}
  0x35   : > { %s1104_s30 = scalar_lea.vmem %s1409_s11, 768  ;;  %p1112_p6 = scmp.lt.s32.totalorder %s1409_s11, %s1409_s11 }
  0x36   : > { %p1105_p0 = scmp.ne.s32.totalorder %s1409_s11, %s1104_s30  ;;  %p1113_p8 = scmp.lt.s32.totalorder %s1104_s30, %s1104_s30 }
  0x38   : > { %p1107_p2 = pnand %p1105_p0, %p1421_p7  ;;  %p1114_p9 = por %p1113_p8, %p1112_p6 }
  0x3a   : > { %p1108_p4 = pneg %p1107_p2 }
  0x3c   : > { %p1115_p10 = pnand %p1114_p9, %p1108_p4 }
  0x3e   : > { %1118 = shalt.err (!%p1115_p10)
}
  0x3f   : > { %983 = dma.hbm_to_vmem [thread:$0]  (!%p1405_p5), %s1702_s3, 768, %s1409_s11, [#allocation10], %s1316_s24, %s1316_s24, %s1317_s25  }
  0x40   : > { %s1119_s13 = scalar_lea.hbm %s1701_s2, 16 }
  0x41   : > { %p1120_p11 = scmp.ne.s32.totalorder %s1701_s2, %s1119_s13  ;;  %p1126_p0 = scmp.lt.u32.totalorder %s1119_s13, %s1701_s2 }
  0x43   : > { %p1122_p12 = pnand %p1120_p11, %p1421_p7 }
  0x45   : > { %p1123_p13 = pneg %p1122_p12 }
  0x47   : > { %p1128_p2 = pnand %p1126_p0, %p1123_p13 }
  0x49   : > { %1131 = shalt.err (!%p1128_p2)
}
  0x4a   : > { %s1132_s11 = scalar_lea.vmem %s1411_s14, 16  ;;  %s1139_s19 = scalar_lea.vmem %s1411_s14, 32 }
  0x4b   : > { %p1133_p4 = scmp.ne.s32.totalorder %s1411_s14, %s1132_s11  ;;  %p1140_p9 = scmp.lt.s32.totalorder %s1411_s14, %s1411_s14 }
  0x4c   : > { %p1141_p10 = scmp.lt.s32.totalorder %s1139_s19, %s1132_s11 }
  0x4d   : > { %p1135_p6 = pnand %p1133_p4, %p1421_p7 }
  0x4e   : > { %p1142_p11 = por %p1141_p10, %p1140_p9 }
  0x4f   : > { %p1136_p8 = pneg %p1135_p6 }
  0x51   : > { %p1143_p12 = pnand %p1142_p11, %p1136_p8 }
  0x53   : > { %1146 = shalt.err (!%p1143_p12)
}
  0x54   : > { %980 = dma.hbm_to_vmem [thread:$0]  (!%p1405_p5), %s1701_s2, 16, %s1411_s14, [#allocation7]  }
  0x55   : > { %s1318_s22 = smov [#allocation11]   ;;  %s1147_s13 = scalar_lea.hbm %s1703_s4, 48 }
  0x56   : > { %s260_s23 = sshll.u32 %s1318_s22, 4  ;;  %p1148_p13 = scmp.ne.s32.totalorder %s1703_s4, %s1147_s13  ;;  %s261_s23 = int_to_ptr.vmem [resolvable:$true] %s260_s23 }
  0x57   : > { %p1154_p4 = scmp.lt.u32.totalorder %s1147_s13, %s1703_s4 }
  0x58   : > { %p1150_p0 = pnand %p1148_p13, %p1421_p7 }
  0x5a   : > { %p1151_p2 = pneg %p1150_p0 }
  0x5c   : > { %p1156_p6 = pnand %p1154_p4, %p1151_p2 }
  0x5e   : > { %1159 = shalt.err (!%p1156_p6)
}
  0x5f   : > { %s1160_s14 = scalar_lea.vmem %s261_s23, 48  ;;  %s1167_s11 = scalar_lea.vmem %s261_s23, 64 }
  0x60   : > { %p1161_p8 = scmp.ne.s32.totalorder %s261_s23, %s1160_s14  ;;  %p1168_p11 = scmp.lt.s32.totalorder %s261_s23, %s261_s23 }
  0x61   : > { %p1169_p12 = scmp.lt.s32.totalorder %s1167_s11, %s1160_s14 }
  0x62   : > { %p1163_p9 = pnand %p1161_p8, %p1421_p7 }
  0x63   : > { %p1170_p1 = por %p1169_p12, %p1168_p11 }
  0x64   : > { %p1164_p10 = pneg %p1163_p9 }
  0x66   : > { %p1171_p3 = pnand %p1170_p1, %p1164_p10 }
  0x68   : > { %1174 = shalt.err (!%p1171_p3)
}
  0x69   : > { %s1319_s19 = smov 16   ;;  %s1320_s21 = smov 1  }
  0x6a   : > { %986 = dma.hbm_to_vmem [thread:$0]  (!%p1405_p5), %s1703_s4, 48, %s261_s23, [#allocation10], %s1319_s19, %s1319_s19, %s1320_s21  }
  0x6b   : > { %s1321_s6 = smov [#allocation12]   ;;  %s1175_s16 = scalar_lea.hbm %s1704_s5, 256 }
  0x6c   : > { %s273_s10 = sshll.u32 %s1321_s6, 4  ;;  %p1176_p1 = scmp.ne.s32.totalorder %s1704_s5, %s1175_s16  ;;  %s274_s10 = int_to_ptr.vmem [resolvable:$true] %s273_s10 }
  0x6d   : > { %p1182_p0 = scmp.lt.u32.totalorder %s1175_s16, %s1704_s5 }
  0x6e   : > { %p1178_p3 = pnand %p1176_p1, %p1421_p7 }
  0x70   : > { %p1179_p13 = pneg %p1178_p3 }
  0x72   : > { %p1184_p2 = pnand %p1182_p0, %p1179_p13 }
  0x74   : > { %1187 = shalt.err (!%p1184_p2)
}
  0x75   : > { %s1188_s23 = scalar_lea.vmem %s274_s10, 256  ;;  %p1196_p9 = scmp.lt.s32.totalorder %s274_s10, %s274_s10 }
  0x76   : > { %p1189_p4 = scmp.ne.s32.totalorder %s274_s10, %s1188_s23  ;;  %p1197_p10 = scmp.lt.s32.totalorder %s1188_s23, %s1188_s23 }
  0x78   : > { %p1191_p6 = pnand %p1189_p4, %p1421_p7  ;;  %p1198_p11 = por %p1197_p10, %p1196_p9 }
  0x7a   : > { %p1192_p8 = pneg %p1191_p6 }
  0x7c   : > { %p1199_p12 = pnand %p1198_p11, %p1192_p8 }
  0x7e   : > { %1202 = shalt.err (!%p1199_p12)
}
  0x7f   : > { %989 = dma.hbm_to_vmem [thread:$0]  (!%p1405_p5), %s1704_s5, 256, %s274_s10, [#allocation13], %s1316_s24, %s1316_s24, %s1317_s25  }
  0x80   : > { %s853_s12 = sadd.s32 4294967294, %s1311_s29   ;;  %s1536_s20 = sadd.s32 1, %s1311_s29  }
  0x81   : > { %s35_s30 = sadd.s32 1, %s1307_s28  ;;  %s32_s22 = ssub.s32 %s1311_s29, %s1536_s20 }
  0x82   : > { %p42_p7 = scmp.ne.s32.totalorder %s1307_s28, %s1303_s27  ;;  %p33_p1 = scmp.eq.s32.totalorder %s32_s22, 0 }
  0x83   : > { %p43_p3 = scmp.eq.s32.totalorder %s1311_s29, 0  ;;  %p48_p13 = scmp.ne.s32.totalorder %s1303_s27, %s1299_s26 }
  0x84   : > { %p198_p0 = scmp.eq.s32.totalorder %s1390_s8, 2  ;;  %p1713_p4 = scmp.eq.s32.totalorder %s1390_s8, 0 }
  0x85   : > { %s1548_s6 = scalar_select %p33_p1, %s1307_s28, %s35_s30  }
  0x86   : > { %p44_p2 = por %p43_p3, %p42_p7  ;;  %p1552_p6 = por %p1713_p4, %p48_p13 }
  0x87   : > { %p1556_p5 = por %p198_p0, %p42_p7  ;;  %p204_p8 = scmp.eq.s32.totalorder %s853_s12, 2 }
  0x88   : > { %p1003_p9 = scmp.lt.s32.totalorder %s1311_s29, 3  ;;  %s290_s25 = sand.u32 1, %s1307_s28  }
  0x89   : > { %s1715_s24 = scalar_select %p1556_p5, 1, 0 }
  0x8a   : > { %p1562_p10 = por %p204_p8, %p48_p13  ;;  %s861_s15 = sshll.u32 %s290_s25, 2 }
  0x8b   : > { %s862_s16 = sshll.u32 %s1311_s29, 6  ;;  %s294_s11 = scalar_lea.vmem [#allocation3], %s861_s15 }
  0x8c   : > { %s1716_s10 = scalar_select %p1562_p10, 1, 0 }
  0x8d   : > { %s1570_s14 = scalar_lea.hbm %s1699_s0, %s862_s16  ;;  %s301_s23 = sshll.u32 %s294_s11, 4  ;;  %s1576_s23 = int_to_ptr.vmem [resolvable:$true] %s301_s23 }
  0x8e   : > { %p1572_p11 = pnand %p1003_p9, %p44_p2  ;;  %s291_s21 = scalar_lea.sflag [#allocation4], %s290_s25 }
  0x8f   : > { %s1203_s12 = scalar_lea.hbm %s1570_s14, 64  ;;  %s1208_s15 = scalar_lea.hbm %s1699_s0, 192 }
  0x90   : > { %p1204_p12 = scmp.ne.s32.totalorder %s1570_s14, %s1203_s12  ;;  %p1205_p7 = pneg %p1572_p11 }
  0x91   : > { %p1209_p13 = scmp.lt.u32.totalorder %s1570_s14, %s1699_s0  ;;  %p1210_p0 = scmp.lt.u32.totalorder %s1208_s15, %s1203_s12 }
  0x92   : > { %p1206_p1 = pnand %p1205_p7, %p1204_p12  ;;  %p1212_p4 = scmp.lt.u32.totalorder %s1203_s12, %s1570_s14 }
  0x93   : > { %p1211_p2 = por %p1210_p0, %p1209_p13 }
  0x94   : > { %p1207_p3 = pneg %p1206_p1 }
  0x95   : > { %p1213_p8 = por %p1212_p4, %p1211_p2 }
  0x97   : > { %p1214_p9 = pnand %p1213_p8, %p1207_p3 }
  0x99   : > { %1217 = shalt.err (!%p1214_p9)
}
  0x9a   : > { %s1218_s25 = scalar_lea.vmem %s1576_s23, 64  ;;  %s1322_s18 = smov [#allocation3]  }
  0x9b   : > { %p1219_p12 = scmp.ne.s32.totalorder %s1576_s23, %s1218_s25  ;;  %s1223_s11 = sshll.u32 %s1322_s18, 4  ;;  %s1224_s11 = int_to_ptr.vmem [resolvable:$false] %s1223_s11 }
  0x9c   : > { %s1225_s30 = scalar_lea.vmem %s1224_s11, 128  ;;  %p1226_p5 = scmp.lt.s32.totalorder %s1576_s23, %s1224_s11 }
  0x9d   : > { %p1221_p1 = pnand %p1219_p12, %p1205_p7  ;;  %p1227_p13 = scmp.lt.s32.totalorder %s1225_s30, %s1218_s25 }
  0x9f   : > { %p1222_p10 = pneg %p1221_p1  ;;  %p1228_p0 = por %p1227_p13, %p1226_p5 }
  0xa1   : > { %p1229_p2 = pnand %p1228_p0, %p1222_p10 }
  0xa3   : > { %1232 = shalt.err (!%p1229_p2)
}
  0xa4   : > { %993 = dma.hbm_to_vmem [thread:$0]  (!%p1572_p11), %s1570_s14, 64, %s1576_s23, %s291_s21  }
  0xa5   : > { %p1718_p3 = scmp.ne.s32.totalorder %s1710_s9, 0 }
  0xa6   : > { %s1606_s12 = sand.u32 (!%p1718_p3), 1, %s1303_s27  }
  0xa7   : > { %310 = sbr.rel (%p1718_p3) target bundleno = 1308 (0x51c), region = 48  ;;  %s864_s22 = sshll.u32 (!%p1718_p3), %s1606_s12, 2 }
  0xa8   : > { %s313_s15 = scalar_lea.sflag (!%p1718_p3), [#allocation4], %s1606_s12  ;;  %s316_s16 = scalar_lea.vmem (!%p1718_p3), [#allocation3], %s864_s22 }
  0xae   : > { %1278 = dma.done.wait (%p1552_p6), %s313_s15, 64  }
  0xaf   : > { %1280 = vsyncadd (%p1552_p6), %s313_s15, 4294967232  ;;  %p1719_p5 = scmp.eq.s32.totalorder %s1390_s8, 0 }
  0xb1   : > { %1282 = dma.done.wait (%p1719_p5), [#allocation7], 272   ;;  %p1720_p10 = pmov %p1719_p5 }
  0xb2   : > { %p1721_p11 = pmov %p1719_p5 }
  0xb3   : > { %1284 = vsyncadd (%p1720_p10), [#allocation7], 4294967024 }
  0xb4   : > { %1286 = dma.done.wait (%p1721_p11), [#allocation10], 816   ;;  %p1722_p7 = pmov %p1719_p5 }
  0xb5   : > { %p1723_p4 = pmov %p1719_p5 }
  0xb6   : > { %1288 = vsyncadd (%p1722_p7), [#allocation10], 4294966480 }
  0xb7   : > { %1290 = dma.done.wait (%p1723_p4), [#allocation13], 256   ;;  %p1724_p8 = pmov %p1723_p4 }
  0xb8   : > { %v1323_v1 = vmov 0.0   ;;  %vm1324_vm0 = vmmov 0   ;;  %v1053_v2 = vld [vmem:[#allocation6] sm:$0xff]   ;;  %v1054_v3 = vld [vmem:[#allocation6 + $0x8] sm:$0xff]   ;;  %vm392_vm1 = vcmask 261120   ;;  %v1055_v5 = vld [vmem:[#allocation9] sm:$0xff]  }
  0xb9   : > { %1292 = vsyncadd (%p1724_p8), [#allocation13], 4294967040  ;;  %910 = vmatprep.subr.bf16.mxu0 %v1323_v1  ;;  %914 = vmatprep.mubr.msk.bf16.mxu0 %vm1324_vm0, %v1323_v1  ;;  %v368_v4 = vld [vmem:[%s316_s16] sm:$0xf]  ;;  %v871_v7 = vld [vmem:[#allocation8] ss:$0 sm:$0xff] }
  0xba   : > { %918 = vmatprep.subr.bf16.mxu1 %v1323_v1  ;;  %922 = vmatprep.mubr.msk.bf16.mxu1 %vm1324_vm0, %v1323_v1  ;;  %v1056_v6 = vld [vmem:[#allocation9 + $0x8] sm:$0xff]   ;;  %v1057_v16 = vld [vmem:[#allocation9 + $0x10] sm:$0xff]   ;;  %v1058_v17 = vld [vmem:[#allocation9 + $0x18] sm:$0xff]   ;;  %s870_s9 = sshll.u32 %s1606_s12, 3  ;;  %s892_s13 = sshll.u32 %s1390_s8, 7  ;;  %vm719_vm2 = vcmask 7168  }
  0xbb   : > { %911 = vmatpush3.bf16.msra.mxu0 %v1053_v2  ;;  %919 = vmatpush3.bf16.msra.mxu1 %v1055_v5  ;;  %v875_v18 = vld [vmem:[#allocation11] ss:$0 sm:$0xff]  ;;  %v1059_v28 = vld [vmem:[#allocation9 + $0x20] sm:$0xff]   ;;  %v1060_v29 = vld [vmem:[#allocation9 + $0x28] sm:$0xff]   ;;  %s366_s14 = scalar_lea.vmem [#allocation14], %s870_s9  ;;  %s1656_s17 = scalar_lea.hbm %s1706_s7, %s892_s13 }
  0xbc   : > { %912 = vmatprep.subr.bf16.mxu0 %v1323_v1  ;;  %920 = vmatprep.subr.bf16.mxu1 %v1323_v1  ;;  %v879_v30 = vld [vmem:[#allocation11 + $0x1] ss:$0 sm:$0xff]  ;;  %v1061_v40 = vld [vmem:[#allocation12] sm:$0xff]   ;;  %v1062_v41 = vld [vmem:[#allocation12 + $0x8] sm:$0xff]   ;;  %s735_s23 = sshll.u32 %s366_s14, 4  ;;  %s722_s8 = scalar_lea.sflag [#allocation5], %s1606_s12  ;;  %s1658_s23 = int_to_ptr.vmem [resolvable:$true] %s735_s23 }
  0xbd   : > { %v883_v42 = vld [vmem:[#allocation11 + $0x2] ss:$0 sm:$0xff]  ;;  %v887_v52 = vld [vmem:[#allocation2] ss:$0 sm:$0xff]  ;;  %s1233_s25 = scalar_lea.vmem %s1658_s23, 128  ;;  %p1725_p9 = scmp.ne.s32.totalorder %s1715_s24, 0 }
  0xbe   : > { %p1234_p6 = scmp.ne.s32.totalorder %s1658_s23, %s1233_s25  ;;  %s1325_s18 = smov [#allocation14]  }
  0xbf   : > { %913 = vmatpush3.bf16.msra.mxu0 %v1054_v3  ;;  %921 = vmatpush3.bf16.msra.mxu1 %v1056_v6  ;;  %s1237_s11 = sshll.u32 %s1325_s18, 4  ;;  %s1238_s11 = int_to_ptr.vmem [resolvable:$false] %s1237_s11 }
  0xc0   : > { %926 = vmatprep.subr.bf16.mxu0 %v1323_v1  ;;  %934 = vmatprep.subr.bf16.mxu1 %v1323_v1  ;;  %p1235_p12 = pnand %p1234_p6, %p1725_p9  ;;  %s1239_s30 = scalar_lea.vmem %s1238_s11, 256 }
  0xc1   : > { %p1240_p13 = scmp.lt.s32.totalorder %s1658_s23, %s1238_s11  ;;  %p1241_p0 = scmp.lt.s32.totalorder %s1239_s30, %s1233_s25 }
  0xc2   : > { %915 = vmatmul.mubr.msk.bf16.vlgmr.msra.gmra.mrb[0].mxu0 %vm392_vm1, %v368_v4  ;;  %p1236_p1 = pneg %p1235_p12 }
  0xc3   : > { %930 = vmatprep.mubr.msk.bf16.mxu0 %vm1324_vm0, %v1323_v1  ;;  %927 = vmatpush3.bf16.msra.mxu0 %v1057_v16  ;;  %p1242_p2 = por %p1241_p0, %p1240_p13 }
  0xc4   : > { %928 = vmatprep.subr.bf16.mxu0 %v1323_v1 }
  0xc5   : > { %p1243_p3 = pnand %p1242_p2, %p1236_p1 }
  0xc7   : > { %929 = vmatpush3.bf16.msra.mxu0 %v1058_v17 }
  0xc8   : > { %942 = vmatprep.subr.bf16.mxu0 %v1323_v1 }
 0x195   : > { %v430_v8 = vpop.f32.mrb[0].mxu0 }
 0x196   : > { %v431_v9 = vadd.f32 %v871_v7, %v430_v8  ;;  %v916_v10 = vpop.f32.mrb[1].mxu0 }
 0x197   : > { %v433_v11 = vpop.f32.mrb[2].mxu0 }
 0x198   : > { %v436_v12 = vmul.f32 0.01, %v431_v9  ;;  %v917_v13 = vpop.f32.mrb[3].mxu0 }
 0x19a   : > { %v437_v14 = vmax.f32 %v431_v9, %v436_v12 }
 0x19c   : > { %v438_v15 = vpack.c.bf16 %v437_v14, %v437_v14 }
 0x19e   : > { %923 = vmatmul.mubr.msk.bf16.vlgmr.msra.gmra.mrb[0].mxu1 %vm392_vm1, %v438_v15 }
 0x19f   : > { %938 = vmatprep.mubr.msk.bf16.mxu1 %vm1324_vm0, %v1323_v1  ;;  %935 = vmatpush3.bf16.msra.mxu1 %v1059_v28 }
 0x1a0   : > { %936 = vmatprep.subr.bf16.mxu1 %v1323_v1 }
 0x1a3   : > { %937 = vmatpush3.bf16.msra.mxu1 %v1060_v29 }
 0x271   : > { %v499_v19 = vpop.f32.mrb[0].mxu1 }
 0x272   : > { %v500_v20 = vadd.f32 %v875_v18, %v499_v19  ;;  %v924_v21 = vpop.f32.mrb[1].mxu1 }
 0x273   : > { %v502_v22 = vpop.f32.mrb[2].mxu1 }
 0x274   : > { %v505_v23 = vmul.f32 0.01, %v500_v20  ;;  %v925_v24 = vpop.f32.mrb[3].mxu1 }
 0x276   : > { %v506_v25 = vmax.f32 %v500_v20, %v505_v23 }
 0x278   : > { %v507_v26 = vadd.f32 %v506_v25, %v437_v14 }
 0x27a   : > { %v508_v27 = vpack.c.bf16 %v507_v26, %v507_v26 }
 0x27c   : > { %931 = vmatmul.mubr.msk.bf16.vlgmr.msra.gmra.mrb[4].mxu0 %vm392_vm1, %v508_v27 }
 0x27d   : > { %946 = vmatprep.mubr.msk.bf16.mxu0 %vm1324_vm0, %v1323_v1  ;;  %943 = vmatpush3.bf16.msra.mxu0 %v1061_v40 }
 0x27e   : > { %944 = vmatprep.subr.bf16.mxu0 %v1323_v1 }
 0x281   : > { %945 = vmatpush3.bf16.msra.mxu0 %v1062_v41 }
 0x34f   : > { %v571_v31 = vpop.f32.mrb[4].mxu0 }
 0x350   : > { %v572_v32 = vadd.f32 %v879_v30, %v571_v31  ;;  %v932_v33 = vpop.f32.mrb[5].mxu0 }
 0x351   : > { %v574_v34 = vpop.f32.mrb[6].mxu0 }
 0x352   : > { %v577_v35 = vmul.f32 0.01, %v572_v32  ;;  %v933_v36 = vpop.f32.mrb[7].mxu0 }
 0x354   : > { %v578_v37 = vmax.f32 %v572_v32, %v577_v35 }
 0x356   : > { %v579_v38 = vadd.f32 %v578_v37, %v507_v26 }
 0x358   : > { %v580_v39 = vpack.c.bf16 %v579_v38, %v579_v38 }
 0x35a   : > { %939 = vmatmul.mubr.msk.bf16.vlgmr.msra.gmra.mrb[4].mxu1 %vm392_vm1, %v580_v39 }
 0x42d   : > { %v643_v43 = vpop.f32.mrb[4].mxu1 }
 0x42e   : > { %v644_v44 = vadd.f32 %v883_v42, %v643_v43  ;;  %v940_v45 = vpop.f32.mrb[5].mxu1 }
 0x42f   : > { %v646_v46 = vpop.f32.mrb[6].mxu1 }
 0x430   : > { %v649_v47 = vmul.f32 0.01, %v644_v44  ;;  %v941_v48 = vpop.f32.mrb[7].mxu1 }
 0x432   : > { %v650_v49 = vmax.f32 %v644_v44, %v649_v47 }
 0x434   : > { %v651_v50 = vadd.f32 %v650_v49, %v579_v38 }
 0x436   : > { %v652_v51 = vpack.c.bf16 %v651_v50, %v651_v50 }
 0x438   : > { %947 = vmatmul.mubr.msk.bf16.vlgmr.msra.gmra.mrb[8].mxu0 %vm392_vm1, %v652_v51 }
 0x50b   : > { %v713_v53 = vpop.f32.mrb[8].mxu0 }
 0x50c   : > { %v714_v54 = vadd.f32 %v887_v52, %v713_v53  ;;  %v948_v55 = vpop.f32.mrb[9].mxu0 }
 0x50d   : > { %v716_v56 = vpop.f32.mrb[10].mxu0 }
 0x50e   : > { %v949_v57 = vpop.f32.mrb[11].mxu0  ;;  %720 = vst.msk [vmem:[%s366_s14] sm:$0xff] %vm719_vm2, %v714_v54 }
 0x50f   : > { %1246 = shalt.err (!%p1243_p3)
}
 0x510   : > { %s1247_s12 = scalar_lea.hbm %s1656_s17, 128  ;;  %s1251_s16 = scalar_lea.hbm %s1706_s7, 384 }
 0x511   : > { %p1248_p5 = scmp.ne.s32.totalorder %s1656_s17, %s1247_s12  ;;  %p1252_p7 = scmp.lt.u32.totalorder %s1656_s17, %s1706_s7 }
 0x512   : > { %p1253_p4 = scmp.lt.u32.totalorder %s1251_s16, %s1247_s12  ;;  %p1255_p6 = scmp.lt.u32.totalorder %s1247_s12, %s1656_s17 }
 0x513   : > { %p1249_p10 = pnand %p1248_p5, %p1725_p9 }
 0x514   : > { %p1254_p8 = por %p1253_p4, %p1252_p7 }
 0x515   : > { %p1250_p11 = pneg %p1249_p10 }
 0x516   : > { %p1256_p12 = por %p1255_p6, %p1254_p8 }
 0x518   : > { %p1257_p1 = pnand %p1256_p12, %p1250_p11 }
 0x51a   : > { %1260 = shalt.err (!%p1257_p1)
}
 0x51b   : > { %972 = dma.vmem_to_hbm [thread:$0]  (%p1725_p9), %s1658_s23, 128, %s1656_s17, %s722_s8  }
 0x51c PF: > { %p1009_p13 = scmp.ge.s32.totalorder %s1311_s29, 2  ;;  %s747_s14 = sand.u32 1, %s1299_s26  }
 0x51d   : > { %p1726_p0 = scmp.ne.s32.totalorder %s1716_s10, 0  ;;  %s748_s19 = scalar_lea.sflag [#allocation5], %s747_s14 }
 0x51f   : > { %p995_p2 = pnand %p1009_p13, %p1726_p0 }
 0x521   : > { %1294 = dma.done.wait (!%p995_p2), %s748_s19, 128  }
 0x522   : > { %1296 = vsyncadd (!%p995_p2), %s748_s19, 4294967168  ;;  %p25_p3 = scmp.ge.s32.totalorder %s1536_s20, 5   ;;  %s1727_s26 = smov %s1303_s27 }
 0x523   : > { %s1728_s27 = smov %s1307_s28  ;;  %s1729_s28 = smov %s1548_s6 }
 0x524   : > { %s1730_s29 = smov %s1536_s20  ;;  %27 = sbr.rel (!%p25_p3) target bundleno = 11 (0xb), region = 117 }
 0x52b   :  { %753 = vsyncpa [#allocation4], 1 }
 0x52c   :  { %755 = vsyncpa [#allocation4 + $0x1], 1 }
 0x52d   :  { %756 = vsyncpa [#allocation7], 1 }
 0x52e   :  { %757 = vsyncpa [#allocation10], 1 }
 0x52f   :  { %758 = vsyncpa [#allocation13], 1 }
 0x530   :  { %759 = vsyncpa [#allocation5], 1 }
 0x531   :  { %761 = vsyncpa [#allocation5 + $0x1], 1 }

</bundles_post_ra>
